<compile_context>
chip_gen: v7x
topology: tpu7x:2x2x1
jax: 0.10.0
libtpu: 0.0.40
codegen_flags: <defaults>
</compile_context>

<pallas_src>
import jax
import jax.numpy as jnp
from jax.experimental import pallas as pl
from jax.experimental.pallas import tpu as pltpu

_MIN_LANE = 128
_LANE_CANDIDATES = (512, 256, 128)   # widest multiple of 128 that divides n wins
_TINY_ROWS = 64                      # grid=(1,) single-block path only below this
_TARGET_STEPS = 8                    # aim for >=8 (even) grid steps (v7x megacore)
_MAX_BLOCK_ELEMS = 512 * 1024        # 2 MiB of f32 per block; in+out double-buffered
                                     # ~8 MiB -> fits v5e/v6e/v7x scoped-VMEM defaults


def _round_up(x, m):
    return ((x + m - 1) // m) * m


def _sublane_multiple(in_dtype, out_dtype):
    """Native packed-sublane tile: 8 rows for 4-byte, 16 for 2-byte, 32 for 1-byte."""
    itemsize = min(jnp.dtype(in_dtype).itemsize, jnp.dtype(out_dtype).itemsize)
    return max(8, 32 // max(itemsize, 1))


def _pick_row_tile(rows, lane, sublane):
    """Row tile for the multi-block path.

    Targets: (a) blocks <= ~2 MiB of f32, (b) an EVEN grid-step count so the
    v7x megacore split is balanced, (c) ~8 steps for mid-size inputs so DMA
    overlaps compute (per-step overhead is only ~0.35 us).
    """
    max_tile = max(sublane, (_MAX_BLOCK_ELEMS // lane) // sublane * sublane)
    if pl.cdiv(rows, max_tile) >= 2 * _TARGET_STEPS:
        # Huge input: biggest tile; with many steps a 1-block imbalance is noise.
        return max_tile
    fallback = min(max_tile, _round_up(pl.cdiv(rows, _TARGET_STEPS), sublane))
    for steps in (8, 10, 12, 6, 14, 16, 4, 2):
        tile = _round_up(pl.cdiv(rows, steps), sublane)
        if sublane <= tile <= max_tile and pl.cdiv(rows, tile) % 2 == 0:
            return tile
    return fallback


def _decaying_sin_kernel(coef_ref, x_ref, o_ref):
    # coef_ref: SMEM f32[6] of per-call folded scalars:
    #   [b_s, b_s*x0, -t, ln|a|, x1, c]   with b_s = sign(a)*b, so
    #   a*sin(b*(x-x0))*exp(-t*|x-x1|) + c
    #     == sin(b_s*x - b_s*x0) * exp(-t*|x-x1| + ln|a|) + c
    # (all scalar algebra/transcendentals were done once per call, outside).
    b_s = coef_ref[0]
    bx0_s = coef_ref[1]
    neg_t = coef_ref[2]
    ln_abs_a = coef_ref[3]
    x1 = coef_ref[4]
    c = coef_ref[5]
    # Cast in-kernel: HBM traffic stays at the input's native width.
    x = x_ref[...].astype(jnp.float32)
    y = jnp.sin(b_s * x - bx0_s) * jnp.exp(neg_t * jnp.abs(x - x1) + ln_abs_a) + c
    o_ref[...] = y.astype(o_ref.dtype)


def decaying_sin_forward(coefficients, X):
    """coefficients: f32[6] = (a, b, c, x0, x1, t); X: arbitrary-shape tensor."""
    orig_shape = X.shape
    orig_dtype = X.dtype
    # Integer inputs would silently truncate on the cast back -> keep float out.
    out_dtype = orig_dtype if jnp.issubdtype(orig_dtype, jnp.floating) else jnp.float32

    x_flat = X.reshape(-1)
    n = x_flat.shape[0]
    if n == 0:
        return jnp.zeros(orig_shape, out_dtype)

    # Fold scalar algebra once per call (6 scalars; negligible XLA work, no
    # per-element cost).  sign(a) folds into sin's odd argument; |a| folds into
    # the exponent (a == 0 gives ln|a| = -inf -> exp(...) == 0, still correct).
    coef = coefficients.astype(jnp.float32)
    a, b, c, x0, x1, t = (coef[i] for i in range(6))
    b_s = jnp.where(a < 0, -b, b)
    folded = jnp.stack([b_s, b_s * x0, -t, jnp.log(jnp.abs(a)), x1, c])

    # Lane-dense slab: widest lane (multiple of 128) that divides n so the
    # (rows, lane) reshape is zero-copy for aligned inputs.
    lane = _MIN_LANE
    for cand in _LANE_CANDIDATES:
        if n % cand == 0:
            lane = cand
            break

    n_lane = _round_up(n, lane)
    lane_ragged = n_lane != n
    if lane_ragged:
        # Only inputs whose size is not a multiple of 128 pay this pad + the
        # output slice below.  Row raggedness never pads: the final grid block
        # is masked by Pallas (pl.cdiv grid).
        # TODO(synk): a fully pad-free ragged path needs an exact-size 1-D
        # output with in-kernel tail masking.
        x_flat = jnp.pad(x_flat, (0, n_lane - n))
    rows = n_lane // lane
    x2d = x_flat.reshape(rows, lane)

    sublane = _sublane_multiple(orig_dtype, out_dtype)
    if rows <= _TINY_ROWS:
        # Genuinely tiny input: single full-array block, zero pipeline overhead,
        # no row padding (full-dim blocks are exempt from the (8,128) rule).
        row_tile = rows
        grid = (1,)
    else:
        row_tile = _pick_row_tile(rows, lane, sublane)
        grid = (pl.cdiv(rows, row_tile),)

    out2d = pl.pallas_call(
        _decaying_sin_kernel,
        out_shape=jax.ShapeDtypeStruct((rows, lane), out_dtype),
        grid_spec=pltpu.PrefetchScalarGridSpec(
            num_scalar_prefetch=0,
            grid=grid,
            in_specs=[
                # 6 folded scalars in SMEM (32 B).  Kept as a plain SMEM operand
                # (not scalar-prefetch) so the float32 payload stays on the
                # proven lowering path; semantics are identical.
                pl.BlockSpec(memory_space=pltpu.SMEM),
                pl.BlockSpec((row_tile, lane), lambda i: (i, 0)),
            ],
            out_specs=pl.BlockSpec((row_tile, lane), lambda i: (i, 0)),
        ),
        compiler_params=pltpu.CompilerParams(
            dimension_semantics=("parallel",),
        ),
    )(folded, x2d)

    if lane_ragged:
        out = out2d.reshape(-1)[:n].reshape(orig_shape)
    else:
        out = out2d.reshape(orig_shape)
    return out


def init_coefficients(key, a=None, b=None, c=None, x0=None):
    # Mirrors torch.distributions.Uniform(0, 0.1).sample((6,)) + optional overrides.
    coefs = jax.random.uniform(key, (6,), minval=0.0, maxval=0.1, dtype=jnp.float32)
    overrides = {0: a, 1: b, 2: c, 3: x0}
    for idx, val in overrides.items():
        if val is not None:
            coefs = coefs.at[idx].set(jnp.float32(val))
    return coefs


def reference_forward(coefficients, X):
    a, b, c, x0, x1, t = [coefficients[i] for i in range(6)]
    return a * jnp.sin(b * (X - x0)) * jnp.exp(-t * jnp.abs(X - x1)) + c


if __name__ == "__main__":
    key = jax.random.PRNGKey(0)
    k_coef, k_x1, k_x2 = jax.random.split(key, 3)

    coefficients = init_coefficients(k_coef, a=0.5, b=2.0, c=0.1, x0=0.25)

    # Canonical small input: tiny single-block path (rows <= 64).
    X = jax.random.normal(k_x1, (2, 4, 16, 16), dtype=jnp.float32)
    out = jax.block_until_ready(decaying_sin_forward(coefficients, X))
    ref = reference_forward(coefficients, X)
    assert out.shape == X.shape and out.dtype == X.dtype
    assert jnp.allclose(out, ref, atol=1e-5, rtol=1e-5)

    # Slightly larger input: multi-block pipelined path (even grid, 6 steps).
    X2 = jax.random.normal(k_x2, (4, 96, 128), dtype=jnp.float32)
    out2 = jax.block_until_ready(decaying_sin_forward(coefficients, X2))
    ref2 = reference_forward(coefficients, X2)
    assert out2.shape == X2.shape and out2.dtype == X2.dtype
    assert jnp.allclose(out2, ref2, atol=1e-5, rtol=1e-5)

    print("KERNEL_OK")
</pallas_src>

<mosaic_0001>
module attributes {stable_mosaic.version = 11 : i64} {
  func.func @_decaying_sin_kernel(%arg0: i32, %arg1: memref<6xf32, #tpu.memory_space<smem>>, %arg2: memref<4x512xf32, #tpu.memory_space<vmem>>, %arg3: memref<4x512xf32, #tpu.memory_space<vmem>>) attributes {dimension_semantics = [#tpu.dimension_semantics<parallel>], iteration_bounds = array<i64: 1>, scalar_prefetch = 0 : i64, scratch_operands = 0 : i64, tpu.core_type = #tpu.core_type<tc>, window_params = [{transform_indices = @transform_0, window_bounds = array<i64: 6>}, {transform_indices = @transform_1, window_bounds = array<i64: 4, 512>}, {transform_indices = @transform_2, window_bounds = array<i64: 4, 512>}]} {
    %c0 = arith.constant 0 : index
    %0 = memref.load %arg1[%c0] : memref<6xf32, #tpu.memory_space<smem>>
    %c1 = arith.constant 1 : index
    %1 = memref.load %arg1[%c1] : memref<6xf32, #tpu.memory_space<smem>>
    %c2 = arith.constant 2 : index
    %2 = memref.load %arg1[%c2] : memref<6xf32, #tpu.memory_space<smem>>
    %c3 = arith.constant 3 : index
    %3 = memref.load %arg1[%c3] : memref<6xf32, #tpu.memory_space<smem>>
    %c4 = arith.constant 4 : index
    %4 = memref.load %arg1[%c4] : memref<6xf32, #tpu.memory_space<smem>>
    %c5 = arith.constant 5 : index
    %5 = memref.load %arg1[%c5] : memref<6xf32, #tpu.memory_space<smem>>
    %c0_0 = arith.constant 0 : index
    %c0_1 = arith.constant 0 : index
    %6 = vector.load %arg2[%c0_0, %c0_1] : memref<4x512xf32, #tpu.memory_space<vmem>>, vector<4x512xf32>
    %7 = vector.broadcast %0 : f32 to vector<4x512xf32>
    %8 = arith.mulf %7, %6 : vector<4x512xf32>
    %9 = vector.broadcast %1 : f32 to vector<4x512xf32>
    %10 = arith.subf %8, %9 : vector<4x512xf32>
    %11 = math.sin %10 : vector<4x512xf32>
    %12 = vector.broadcast %4 : f32 to vector<4x512xf32>
    %13 = arith.subf %6, %12 : vector<4x512xf32>
    %14 = math.absf %13 : vector<4x512xf32>
    %15 = vector.broadcast %2 : f32 to vector<4x512xf32>
    %16 = arith.mulf %15, %14 : vector<4x512xf32>
    %17 = vector.broadcast %3 : f32 to vector<4x512xf32>
    %18 = arith.addf %16, %17 : vector<4x512xf32>
    %19 = math.exp %18 : vector<4x512xf32>
    %20 = arith.mulf %11, %19 : vector<4x512xf32>
    %21 = vector.broadcast %5 : f32 to vector<4x512xf32>
    %22 = arith.addf %20, %21 : vector<4x512xf32>
    %c0_2 = arith.constant 0 : index
    %c0_3 = arith.constant 0 : index
    %23 = vector.load %arg3[%c0_2, %c0_3] : memref<4x512xf32, #tpu.memory_space<vmem>>, vector<4x512xf32>
    tpu.vector_store %arg3[%c0_2, %c0_3], %22 {strides = array<i32>} : memref<4x512xf32, #tpu.memory_space<vmem>>, vector<4x512xf32>,
    return
  }
  func.func @transform_0(%arg0: i32) -> i32 {
    %c0_i32 = arith.constant 0 : i32
    %c0_i32_0 = arith.constant 0 : i32
    return %c0_i32 : i32
  }
  func.func @transform_1(%arg0: i32) -> (i32, i32) {
    %c0_i32 = arith.constant 0 : i32
    %c0_i32_0 = arith.constant 0 : i32
    return %arg0, %c0_i32 : i32, i32
  }
  func.func @transform_2(%arg0: i32) -> (i32, i32) {
    %c0_i32 = arith.constant 0 : i32
    %c0_i32_0 = arith.constant 0 : i32
    return %arg0, %c0_i32 : i32, i32
  }
}

</mosaic_0001>

<bundles_post_ra>
// kernel: tpu_custom_call.1
= control target key start
LH: loop header
LB: loop body
LE: loop exit
PB: predicated region body
PF: predicated region fallthrough
CT: control target
= control target key end

     0   :  { %7 = vsyncpa [#allocation5], 0  ;;  %s568_s0 = inlined_call_operand.hbm [shape: f32[6], index: 0, kind: input, shape index: {}]   ;;  %s569_s1 = inlined_call_operand.hbm [shape: f32[4,512], index: 1, kind: input, shape index: {}]   ;;  %s570_s2 = inlined_call_operand.hbm [shape: f32[4,512], index: 2, kind: output, shape index: {}]  }
   0x1   :  { %8 = vsyncpa [#allocation3], 0 }
   0x2   :  { %9 = vsyncpa [#allocation4], 0  ;;  %s337_s11 = scalar_lea.hbm %s568_s0, 16 }
   0x3   :  { %p338_p0 = scmp.ne.s32.totalorder %s568_s0, %s337_s11  ;;  %p341_p1 = scmp.lt.u32.totalorder %s337_s11, %s568_s0 }
   0x5   :  { %p343_p2 = pnand %p341_p1, %p338_p0 }
   0x7   :  { %346 = shalt.err (!%p343_p2)
}
   0x8   :  { %s397_s16 = smov [#allocation2]   ;;  %s398_s19 = smov [#allocation6]  }
   0x9   :  { %17 = dma.hbm_to_smem %s568_s0, 16, %s397_s16, [#allocation5]  }
   0xa   :  { %s24_s20 = sshll.u32 %s398_s19, 4  ;;  %s347_s23 = scalar_lea.hbm %s569_s1, 256  ;;  %s25_s20 = int_to_ptr.vmem [resolvable:$true] %s24_s20 }
   0xb   :  { %p348_p3 = scmp.ne.s32.totalorder %s569_s1, %s347_s23  ;;  %p351_p4 = scmp.lt.u32.totalorder %s347_s23, %s569_s1 }
   0xd   :  { %p353_p5 = pnand %p351_p4, %p348_p3 }
   0xf   :  { %356 = shalt.err (!%p353_p5)
}
  0x10   :  { %s357_s28 = scalar_lea.vmem %s25_s20, 256  ;;  %p362_p7 = scmp.lt.s32.totalorder %s25_s20, %s25_s20 }
  0x11   :  { %p358_p6 = scmp.ne.s32.totalorder %s25_s20, %s357_s28  ;;  %p363_p8 = scmp.lt.s32.totalorder %s357_s28, %s357_s28 }
  0x13   :  { %p364_p9 = por %p363_p8, %p362_p7 }
  0x15   :  { %p365_p10 = pnand %p364_p9, %p358_p6 }
  0x17   :  { %368 = shalt.err (!%p365_p10)
}
  0x18   :  { %27 = dma.hbm_to_vmem [thread:$0]  %s569_s1, 256, %s25_s20, [#allocation3]  }
  0x19   :  { %391 = dma.done.wait [#allocation5], 16  }
  0x1a   :  { %392 = vsyncadd [#allocation5], 4294967280 }
  0x1b   :  { %393 = dma.done.wait [#allocation3], 256  }
  0x1c   :  { %394 = vsyncadd [#allocation3], 4294967040 }
  0x1d   :  { %34 = sfence }
  0x1e   :  { %s35_s30 = sld [smem:[#allocation2]]  ;;  %s295_s3 = sld [smem:[#allocation2 + $0x1]]  ;;  %v445_v0 = vld [vmem:[#allocation6] sm:$0xff]  ;;  %v447_v1 = vld [vmem:[#allocation6 + $0x8] sm:$0xff]  ;;  %v399_v30 = vmov 683565275  }
  0x1f   :  { %v400_v32 = vmov 2475754826   ;;  %v401_v34 = vmov 2131351028   ;;  %v402_v36 = vmov 2102212464  }
  0x20   :  { %v403_v38 = vmov 920167782   ;;  %v404_v46 = vmov 1326507024   ;;  %s509_s1 = sld [smem:[#allocation2 + $0x4]]  ;;  %s514_s4 = sld [smem:[#allocation2 + $0x2]] }
  0x21   :  { %s518_s5 = sld [smem:[#allocation2 + $0x3]]  ;;  %s546_s6 = sld [smem:[#allocation2 + $0x5]] }
  0x22   :  { %s405_s7 = smov [#allocation7]  }
  0x23   :  { %s285_s8 = sshll.u32 %s405_s7, 4  ;;  %s286_s8 = int_to_ptr.vmem [resolvable:$true] %s285_s8 }
  0x24   :  { %v43_v2 = vstv %s35_s30  ;;  %v46_v3 = vstv %s295_s3  ;;  %s369_s9 = scalar_lea.vmem %s286_s8, 256  ;;  %p374_p12 = scmp.lt.s32.totalorder %s286_s8, %s286_s8 }
  0x25   :  { %v44_v4 = vmul.f32 %v43_v2, %v445_v0  ;;  %v45_v5 = vmul.f32 %v43_v2, %v447_v1  ;;  %p370_p11 = scmp.ne.s32.totalorder %s286_s8, %s369_s9  ;;  %p375_p13 = scmp.lt.s32.totalorder %s369_s9, %s369_s9 }
  0x27   :  { %v451_v6 = vsub.f32 %v44_v4, %v46_v3  ;;  %v453_v7 = vsub.f32 %v45_v5, %v46_v3  ;;  %p376_p0 = por %p375_p13, %p374_p12 }
  0x29   :  { %v49_v8 = vand.u32 2147483647, %v451_v6  ;;  %v52_v9 = vand.u32 2139095040, %v451_v6  ;;  %v153_v10 = vand.u32 2147483647, %v453_v7  ;;  %v156_v11 = vand.u32 2139095040, %v453_v7  ;;  %p377_p1 = pnand %p376_p0, %p370_p11 }
  0x2a   :  { %vm51_vm14 = vcmp.lt.s32.totalorder %v451_v6, 0 }
  0x2b   :  { %v53_v12 = vshrl.u32 %v52_v9, 23  ;;  %v56_v13 = vand.u32 8388607, %v49_v8  ;;  %v157_v14 = vshrl.u32 %v156_v11, 23  ;;  %v160_v15 = vand.u32 8388607, %v153_v10 }
  0x2c   :  { %vm528_vm15 = vcmp.le.f32.partialorder %v49_v8, 0.7853982 }
  0x2d   :  { %v300_v16 = vadd.s32 4294967169, %v53_v12  ;;  %v304_v17 = vadd.s32 4294967169, %v157_v14  ;;  %v57_v19 = vor.u32 8388608, %v56_v13  ;;  %v161_v20 = vor.u32 8388608, %v160_v15 }
  0x2f   :  { %v59_v18 = vadd.s32 1, %v300_v16  ;;  %v163_v21 = vadd.s32 1, %v304_v17  ;;  %v463_v26 = vshll.u32 %v57_v19, 8  ;;  %v465_v28 = vshll.u32 %v161_v20, 8 }
  0x31   :  { %vm60_vm0 = vcmp.gt.s32.totalorder %v59_v18, 0  ;;  %vm164_vm1 = vcmp.gt.s32.totalorder %v163_v21, 0 }
  0x32   :  { %v61_v22 = vsel %vm60_vm0, %v59_v18, 0  ;;  %v165_v25 = vsel %vm164_vm1, %v163_v21, 0  ;;  %vm155_vm0 = vcmp.lt.s32.totalorder %v453_v7, 0  ;;  %vm541_vm1 = vcmp.le.f32.partialorder %v153_v10, 0.7853982 }
  0x33   :  { %v62_v23 = vshrl.u32 %v61_v22, 5  ;;  %v63_v24 = vand.u32 31, %v61_v22  ;;  %v167_v27 = vand.u32 31, %v165_v25  ;;  %v467_v40 = vshrl.u32 %v165_v25, 5 }
  0x35   :  { %v64_v29 = vsub.s32 32, %v63_v24  ;;  %v66_v31 = vshll.u32 %v399_v30, %v63_v24  ;;  %v69_v33 = vshll.u32 %v400_v32, %v63_v24  ;;  %v72_v35 = vshll.u32 %v401_v34, %v63_v24 }
  0x36   :  { %v75_v37 = vshll.u32 %v402_v36, %v63_v24  ;;  %v78_v39 = vshll.u32 %v403_v38, %v63_v24  ;;  %vm81_vm2 = vcmp.lt.s32.totalorder %v62_v23, 1  ;;  %vm82_vm3 = vcmp.lt.s32.totalorder %v62_v23, 2 }
  0x37   :  { %v65_v41 = vshrl.u32 %v399_v30, %v64_v29  ;;  %v67_v42 = vshrl.u32 %v400_v32, %v64_v29  ;;  %v70_v43 = vshrl.u32 %v401_v34, %v64_v29  ;;  %v73_v44 = vshrl.u32 %v402_v36, %v64_v29 }
  0x38   :  { %v76_v45 = vshrl.u32 %v403_v38, %v64_v29  ;;  %v79_v47 = vshrl.u32 %v404_v46, %v64_v29  ;;  %vm84_vm4 = vcmp.lt.s32.totalorder %v62_v23, 4  ;;  %v168_v51 = vsub.s32 32, %v167_v27 }
  0x39   :  { %v68_v48 = vor.u32 %v67_v42, %v66_v31  ;;  %v71_v49 = vor.u32 %v70_v43, %v69_v33  ;;  %v74_v50 = vor.u32 %v73_v44, %v72_v35  ;;  %vm83_vm5 = vcmp.lt.s32.totalorder %v62_v23, 3 }
  0x3a   :  { %v77_v52 = vor.u32 %v76_v45, %v75_v37  ;;  %v80_v53 = vor.u32 %v79_v47, %v78_v39  ;;  %v170_v54 = vshll.u32 %v399_v30, %v167_v27  ;;  %v173_v62 = vshll.u32 %v400_v32, %v167_v27 }
  0x3b   :  { %v85_v55 = vsel %vm81_vm2, %v65_v41, %v68_v48  ;;  %v86_v56 = vsel %vm84_vm4, %v74_v50, 2102212464  ;;  %v89_v57 = vsel %vm81_vm2, %v68_v48, %v71_v49  ;;  %v93_v58 = vsel %vm81_vm2, %v71_v49, %v74_v50 }
  0x3c   :  { %v87_v59 = vsel %vm83_vm5, %v71_v49, %v86_v56  ;;  %v90_v60 = vsel %vm84_vm4, %v77_v52, 920167782  ;;  %v94_v61 = vsel %vm84_vm4, %v80_v53, 1326507024  ;;  %v169_v3 = vshrl.u32 %v399_v30, %v168_v51 }
  0x3d   :  { %v91_v63 = vsel %vm83_vm5, %v74_v50, %v90_v60  ;;  %v95_v2 = vsel %vm83_vm5, %v77_v52, %v94_v61  ;;  %v171_v4 = vshrl.u32 %v400_v32, %v168_v51  ;;  %v88_v5 = vsel %vm82_vm3, %v85_v55, %v87_v59 }
  0x3e   :  { %v92_v9 = vsel %vm82_vm3, %v89_v57, %v91_v63  ;;  %v96_v11 = vsel %vm82_vm3, %v93_v58, %v95_v2  ;;  %v174_v12 = vshrl.u32 %v401_v34, %v168_v51  ;;  %v176_v19 = vshll.u32 %v401_v34, %v167_v27 }
  0x3f   :  { %v476_v13 = vmul.u32.u64.low %v463_v26, %v96_v11  ;;  %v477_v14 = vmul.u32.u64.high %v463_v26, %v96_v11, %v476_v13  ;;  %v480_v15 = vmul.u32.u64.low %v463_v26, %v92_v9  ;;  %v481_v16 = vmul.u32.u64.high %v463_v26, %v92_v9, %v480_v15 }
  0x40   :  { %v172_v17 = vor.u32 %v171_v4, %v170_v54  ;;  %v175_v18 = vor.u32 %v174_v12, %v173_v62  ;;  %v177_v20 = vshrl.u32 %v402_v36, %v168_v51  ;;  %v179_v21 = vshll.u32 %v402_v36, %v167_v27 }
  0x41   :  { %v180_v22 = vshrl.u32 %v403_v38, %v168_v51  ;;  %v182_v24 = vshll.u32 %v403_v38, %v167_v27  ;;  %v183_v25 = vshrl.u32 %v404_v46, %v168_v51  ;;  %v104_v23 = vmul.u32 %v463_v26, %v88_v5 }
  0x42   :  { %v178_v29 = vor.u32 %v177_v20, %v176_v19  ;;  %vm185_vm6 = vcmp.lt.s32.totalorder %v467_v40, 1  ;;  %vm186_vm7 = vcmp.lt.s32.totalorder %v467_v40, 2  ;;  %vm106_vm8 = vc.u32 %v477_v14, %v480_v15 }
  0x43   :  { %v107_v30 = vadd.s32 1, %v481_v16  ;;  %v181_v31 = vor.u32 %v180_v22, %v179_v21  ;;  %vm187_vm9 = vcmp.lt.s32.totalorder %v467_v40, 3  ;;  %v184_v32 = vor.u32 %v183_v25, %v182_v24 }
  0x44   :  { %vm188_vm10 = vcmp.lt.s32.totalorder %v467_v40, 4  ;;  %v189_v33 = vsel %vm185_vm6, %v169_v3, %v172_v17  ;;  %v193_v27 = vsel %vm185_vm6, %v172_v17, %v175_v18  ;;  %v197_v36 = vsel %vm185_vm6, %v175_v18, %v178_v29 }
  0x45   :  { %v108_v34 = vsel %vm106_vm8, %v107_v30, %v481_v16  ;;  %v190_v26 = vsel %vm188_vm10, %v178_v29, 2102212464  ;;  %v194_v35 = vsel %vm188_vm10, %v181_v31, 920167782  ;;  %v198_v41 = vsel %vm188_vm10, %v184_v32, 1326507024 }
  0x46   :  { %v109_v37 = vadd.s32 %v108_v34, %v104_v23  ;;  %v191_v38 = vsel %vm187_vm9, %v175_v18, %v190_v26  ;;  %v195_v39 = vsel %vm187_vm9, %v178_v29, %v194_v35  ;;  %v199_v44 = vsel %vm187_vm9, %v181_v31, %v198_v41 }
  0x47   :  { %v192_v42 = vsel %vm186_vm7, %v189_v33, %v191_v38  ;;  %v196_v43 = vsel %vm186_vm7, %v193_v27, %v195_v39  ;;  %v200_v46 = vsel %vm186_vm7, %v197_v36, %v199_v44  ;;  %v257_v2 = vstv %s509_s1 }
  0x48   :  { %v110_v45 = vadd.s32 536870912, %v109_v37  ;;  %v498_v47 = vmul.u32.u64.low %v465_v28, %v196_v43  ;;  %v499_v48 = vmul.u32.u64.high %v465_v28, %v196_v43, %v498_v47  ;;  %v208_v52 = vmul.u32 %v465_v28, %v192_v42 }
  0x49   :  { %v502_v49 = vmul.u32.u64.low %v465_v28, %v200_v46  ;;  %v503_v50 = vmul.u32.u64.high %v465_v28, %v200_v46, %v502_v49  ;;  %v105_v3 = vadd.s32 %v480_v15, %v477_v14  ;;  %v258_v13 = vsub.f32 %v445_v0, %v257_v2 }
  0x4a   :  { %v111_v51 = vshrl.u32 %v110_v45, 30  ;;  %v211_v54 = vadd.s32 1, %v499_v48  ;;  %v262_v15 = vstv %s514_s4  ;;  %v265_v29 = vstv %s518_s5 }
  0x4b   :  { %vm210_vm11 = vc.u32 %v503_v50, %v498_v47  ;;  %v260_v22 = vand.u32 2147483647, %v258_v13  ;;  %v209_v23 = vadd.s32 %v498_v47, %v503_v50  ;;  %v259_v26 = vsub.f32 %v447_v1, %v257_v2 }
  0x4c   :  { %v112_v53 = vshll.u32 %v111_v51, 30  ;;  %v212_v40 = vsel %vm210_vm11, %v211_v54, %v499_v48  ;;  %v135_v31 = vsub.s32 4, %v111_v51  ;;  %vm141_vm5 = vweird.f32 %v451_v6 }
  0x4d   :  { %v213_v56 = vadd.s32 %v212_v40, %v208_v52  ;;  %v263_v33 = vmul.f32 %v262_v15, %v260_v22  ;;  %v261_v45 = vand.u32 2147483647, %v259_v26  ;;  %vm245_vm9 = vweird.f32 %v453_v7 }
  0x4e   :  { %v113_v55 = vsub.s32 %v109_v37, %v112_v53  ;;  %v136_v41 = vsel %vm51_vm14, %v135_v31, %v111_v51 }
  0x4f   :  { %v214_v58 = vadd.s32 536870912, %v213_v56  ;;  %v266_v42 = vadd.f32 %v265_v29, %v263_v33  ;;  %v138_v47 = vsel %vm528_vm15, 0, %v136_v41  ;;  %v264_v52 = vmul.f32 %v262_v15, %v261_v45 }
  0x50   :  { %v115_v57 = vsub.s32 0, %v113_v55  ;;  %v142_v53 = vadd.s32 3, %v138_v47 }
  0x51   :  { %v511_v60 = vshrl.u32 %v214_v58, 30  ;;  %v268_v8 = vmul.f32 1.442695, %v266_v42 }
  0x52   :  { %v301_v59 = vmin.u32 %v115_v57, %v113_v55  ;;  %v267_v57 = vadd.f32 %v265_v29, %v264_v52  ;;  %v143_v58 = vand.u32 3, %v142_v53 }
  0x53   :  { %v216_v28 = vshll.u32 %v511_v60, 30  ;;  %v239_v51 = vsub.s32 4, %v511_v60 }
  0x54   :  { %v117_v61 = vclz %v301_v59  ;;  %v270_v10 = vmul.f32 1.442695, %v267_v57  ;;  %vm148_vm2 = vcmp.eq.s32.totalorder %v143_v58, 2  ;;  %vm145_vm3 = vcmp.eq.s32.totalorder %v143_v58, 0 }
  0x55   :  { %v217_v63 = vsub.s32 %v213_v56, %v216_v28  ;;  %v240_v56 = vsel %vm155_vm0, %v239_v51, %v511_v60  ;;  %vm144_vm4 = vcmp.lt.s32.totalorder %v143_v58, 2 }
  0x56   :  { %v302_v62 = vadd.s32 4294967294, %v117_v61  ;;  %v242_v28 = vsel %vm541_vm1, 0, %v240_v56 }
  0x57   :  { %v219_v5 = vsub.s32 0, %v217_v63  ;;  %v246_v2 = vadd.s32 3, %v242_v28 }
  0x58   :  { %vm303_vm12 = vcmp.lt.s32.totalorder %v302_v62, 0 }
  0x59   :  { %v120_v4 = vsel %vm303_vm12, 0, %v302_v62  ;;  %v305_v16 = vmin.u32 %v219_v5, %v217_v63 }
  0x5a   :  { %v121_v9 = vsub.s32 32, %v120_v4  ;;  %v122_v11 = vshll.u32 %v113_v55, %v120_v4  ;;  %v125_v12 = vsub.s32 4294967266, %v120_v4 }
  0x5b   :  { %v221_v19 = vclz %v305_v16  ;;  %v274_v16 = vstv %s546_s6 }
  0x5c   :  { %v123_v17 = vshrl.u32 %v105_v3, %v121_v9  ;;  %v126_v18 = vadd.s32 127, %v125_v12  ;;  %v247_v12 = vand.u32 3, %v246_v2 }
  0x5d   :  { %v306_v14 = vadd.s32 4294967294, %v221_v19 }
  0x5e   :  { %v124_v20 = vor.u32 %v123_v17, %v122_v11  ;;  %v127_v21 = vshll.u32 %v126_v18, 23  ;;  %vm252_vm6 = vcmp.eq.s32.totalorder %v247_v12, 2  ;;  %vm249_vm7 = vcmp.eq.s32.totalorder %v247_v12, 0 }
  0x5f   :  { %vm307_vm13 = vcmp.lt.s32.totalorder %v306_v14, 0  ;;  %vm248_vm8 = vcmp.lt.s32.totalorder %v247_v12, 2 }
  0x60   :  { %v128_v24 = vor.u32 4788187, %v127_v21  ;;  %v131_v25 = vcvt.s32.f32 %v124_v20  ;;  %v224_v32 = vsel %vm307_vm13, 0, %v306_v14 }
  0x61   :  { %v225_v0 = vsub.s32 32, %v224_v32  ;;  %v226_v27 = vshll.u32 %v217_v63, %v224_v32  ;;  %v229_v34 = vsub.s32 4294967266, %v224_v32 }
  0x62   :  { %v129_v30 = vand.u32 2147483647, %v128_v24 }
  0x63   :  { %v227_v36 = vshrl.u32 %v209_v23, %v225_v0  ;;  %v230_v37 = vadd.s32 127, %v229_v34 }
  0x64   :  { %v132_v35 = vmul.f32 %v131_v25, %v129_v30 }
  0x65   :  { %v228_v43 = vor.u32 %v227_v36, %v226_v27  ;;  %v231_v44 = vshll.u32 %v230_v37, 23 }
  0x66   :  { %v133_v39 = vxor.u32 2147483648, %v132_v35 }
  0x67   :  { %v232_v48 = vor.u32 4788187, %v231_v44  ;;  %v235_v49 = vcvt.s32.f32 %v228_v43 }
  0x68   :  { %v134_v46 = vsel %vm51_vm14, %v133_v39, %v132_v35 }
  0x69   :  { %v137_v1 = vsel %vm528_vm15, %v451_v6, %v134_v46  ;;  %v233_v50 = vand.u32 2147483647, %v232_v48 }
  0x6a   :  { %325 = vcosq.f32 %v137_v1 }
  0x6b   :  { %327 = vsinq.f32 %v137_v1  ;;  %v236_v54 = vmul.f32 %v235_v49, %v233_v50 }
  0x6c   :  { %329 = vpow2.f32 %v268_v8 }
  0x6d   :  { %v237_v40 = vxor.u32 2147483648, %v236_v54 }
  0x6f   :  { %v238_v59 = vsel %vm155_vm0, %v237_v40, %v236_v54 }
  0x70   :  { %v241_v61 = vsel %vm541_vm1, %v453_v7, %v238_v59 }
  0x71   :  { %331 = vcosq.f32 %v241_v61 }
  0x72   :  { %333 = vsinq.f32 %v241_v61 }
  0x73   :  { %335 = vpow2.f32 %v270_v10 }
  0x74   :  { %v326_v62 = vpop.eup %325 }
  0x75   :  { %v328_v63 = vpop.eup %327  ;;  %v149_v60 = vxor.u32 2147483648, %v326_v62 }
  0x76   :  { %v146_v3 = vxor.u32 2147483648, %v328_v63  ;;  %v330_v5 = vpop.eup %329 }
  0x77   :  { %v150_v4 = vsel %vm148_vm2, %v149_v60, %v328_v63 }
  0x78   :  { %v147_v9 = vsel %vm145_vm3, %v326_v62, %v146_v3 }
  0x79   :  { %v151_v11 = vsel %vm144_vm4, %v147_v9, %v150_v4 }
  0x7a   :  { %v152_v13 = vsel %vm141_vm5, nan, %v151_v11 }
  0x7b   :  { %v272_v17 = vmul.f32 %v330_v5, %v152_v13  ;;  %v332_v18 = vpop.eup %331 }
  0x7c   :  { %v334_v20 = vpop.eup %333  ;;  %v253_v21 = vxor.u32 2147483648, %v332_v18 }
  0x7d   :  { %v275_v19 = vadd.f32 %v274_v16, %v272_v17  ;;  %v250_v22 = vxor.u32 2147483648, %v334_v20  ;;  %v336_v14 = vpop.eup %335 }
  0x7e   :  { %v254_v6 = vsel %vm252_vm6, %v253_v21, %v334_v20 }
  0x7f   :  { %277 = vst [vmem:[#allocation7] sm:$0xff] %v275_v19  ;;  %v251_v15 = vsel %vm249_vm7, %v332_v18, %v250_v22 }
  0x80   :  { %v255_v24 = vsel %vm248_vm8, %v251_v15, %v254_v6 }
  0x81   :  { %v256_v25 = vsel %vm245_vm9, nan, %v255_v24 }
  0x82   :  { %v273_v23 = vmul.f32 %v336_v14, %v256_v25 }
  0x84   :  { %v276_v29 = vadd.f32 %v274_v16, %v273_v23 }
  0x86   :  { %278 = vst [vmem:[#allocation7 + $0x8] sm:$0xff] %v276_v29 }
  0x87   :  { %380 = shalt.err (!%p377_p1)
}
  0x88   :  { %s381_s12 = scalar_lea.hbm %s570_s2, 256 }
  0x89   :  { %p382_p2 = scmp.ne.s32.totalorder %s570_s2, %s381_s12  ;;  %p385_p3 = scmp.lt.u32.totalorder %s381_s12, %s570_s2 }
  0x8b   :  { %p387_p4 = pnand %p385_p3, %p382_p2 }
  0x8d   :  { %390 = shalt.err (!%p387_p4)
}
  0x8e   :  { %288 = dma.vmem_to_hbm [thread:$0]  %s286_s8, 256, %s570_s2, [#allocation4]  }
  0x8f   :  { %395 = dma.done.wait [#allocation4], 256  }
  0x90   :  { %396 = vsyncadd [#allocation4], 4294967040 }
  0x91   :  { %292 = vsyncpa [#allocation3], 1 }
  0x92   :  { %293 = vsyncpa [#allocation4], 1 }
  0x93   :  { %294 = vsyncpa [#allocation5], 1 }

</bundles_post_ra>
